<compile_context>
chip_gen: v7x
topology: tpu7x:2x2x1
jax: 0.10.0
libtpu: 0.0.40
codegen_flags: <defaults>
</compile_context>

<pallas_src>
import functools

import jax
import jax.numpy as jnp
from jax.experimental import pallas as pl
from jax.experimental.pallas import tpu as pltpu

_BN_EPS = 1e-5
_LANE = 128     # lane width: output feature dims padded to a multiple of this
_SUBLANE = 8    # batch dim must be a multiple of 8 (BN stats over the full resident block)


def _round_up(n, m):
    return ((n + m - 1) // m) * m


# ---------------------------------------------------------------------------
# Fused kernel: all hidden (linear + batchnorm) layers + final projection.
# refs = [w0,g0,beta0, w1,g1,beta1, ..., w_last, b_last, o_ref]
# Weights are bf16 (MXU-native); everything else is f32.
# ---------------------------------------------------------------------------
def _mlp_fused_kernel(n_hidden, x_ref, *refs):
    o_ref = refs[-1]
    p = refs[:-1]

    x = x_ref[...]                      # f32 activations
    inv_n = 1.0 / x.shape[0]

    idx = 0
    for _ in range(n_hidden):
        w, g, beta = p[idx], p[idx + 1], p[idx + 2]
        idx += 3
        # Linear on the MXU with bf16 operands, f32 accumulation.
        # (Hidden-layer bias omitted: exactly cancelled by training-mode BatchNorm.)
        y = jnp.dot(x.astype(jnp.bfloat16), w[...],
                    preferred_element_type=jnp.float32)
        # Centered batch statistics over the batch (sublane) axis — f32 throughout.
        mean = jnp.sum(y, axis=0, keepdims=True) * inv_n
        d = y - mean
        var = jnp.sum(d * d, axis=0, keepdims=True) * inv_n   # biased var (torch BN train)
        # Fused affine epilogue; rsqrt rides the EUP slot.
        scale = g[...] * jax.lax.rsqrt(var + _BN_EPS)
        x = d * scale + beta[...]

    w, b = p[idx], p[idx + 1]
    o_ref[...] = (
        jnp.dot(x.astype(jnp.bfloat16), w[...], preferred_element_type=jnp.float32)
        + b[...]
    ).astype(o_ref.dtype)


# ---------------------------------------------------------------------------
# Parameter construction (matches the module's shape logic).
# ---------------------------------------------------------------------------
def init_params(key, input_size, output_size, hidden_layers, hidden_size):
    """Unpadded f32 parameters, same shape logic as the PyTorch module."""
    params = []
    in_size, out_size = input_size, hidden_size
    for i in range(hidden_layers):
        if i > 0:
            in_size = hidden_size // 2 ** (i - 1)
            out_size = hidden_size // 2 ** i
        key, kw, kb = jax.random.split(key, 3)
        bound = 1.0 / jnp.sqrt(in_size)
        w = jax.random.uniform(kw, (in_size, out_size), jnp.float32, -bound, bound)
        b = jax.random.uniform(kb, (out_size,), jnp.float32, -bound, bound)
        gamma = jnp.ones((out_size,), jnp.float32)   # BatchNorm1d default weight
        beta = jnp.zeros((out_size,), jnp.float32)   # BatchNorm1d default bias
        params.append(dict(w=w, b=b, gamma=gamma, beta=beta))
        in_size = out_size
    key, kw, kb = jax.random.split(key, 3)
    bound = 1.0 / jnp.sqrt(out_size)
    w = jax.random.uniform(kw, (out_size, output_size), jnp.float32, -bound, bound)
    b = jax.random.uniform(kb, (output_size,), jnp.float32, -bound, bound)
    params.append(dict(w=w, b=b))
    return params


def pad_params(params):
    """Lane-dense padding, done ONCE at init.

    * Output (lane) dims padded to 128 with zeros; gamma/beta zero-padded so padded
      activation columns stay exactly 0 through every layer.
    * Contraction dims NOT padded to 128: layer 0 keeps the raw input width, later
      layers match the previous layer's padded output width.
    * Weights cast to bf16 (MXU-native); bias/gamma/beta kept f32 as (1, out_pad) rows.
    * Hidden-layer biases dropped (absorbed exactly by training-mode BatchNorm).
    """
    padded = []
    prev_out_pad = None
    for layer in params:
        w = layer["w"]
        in_dim, out_dim = w.shape
        in_p = in_dim if prev_out_pad is None else prev_out_pad
        out_p = _round_up(out_dim, _LANE)
        wp = (jnp.zeros((in_p, out_p), jnp.bfloat16)
              .at[:in_dim, :out_dim].set(w.astype(jnp.bfloat16)))
        d = dict(w=wp)
        if "gamma" in layer:
            d["gamma"] = jnp.zeros((1, out_p), jnp.float32).at[0, :out_dim].set(layer["gamma"])
            d["beta"] = jnp.zeros((1, out_p), jnp.float32).at[0, :out_dim].set(layer["beta"])
        else:
            d["b"] = jnp.zeros((1, out_p), jnp.float32).at[0, :out_dim].set(layer["b"])
        padded.append(d)
        prev_out_pad = out_p
    return padded


# ---------------------------------------------------------------------------
# Forward pass: ONE fused pallas_call for the whole MLP.
# ---------------------------------------------------------------------------
def mlp_forward(x, padded_params, *, output_size):
    n, f = x.shape
    assert n % _SUBLANE == 0, "batch must be a multiple of 8 (BN stats over full batch)"
    assert padded_params[0]["w"].shape[0] == f, "input width mismatch"
    n_hidden = len(padded_params) - 1
    out_pad = padded_params[-1]["w"].shape[1]

    flat = []
    for layer in padded_params[:-1]:
        flat += [layer["w"], layer["gamma"], layer["beta"]]
    flat += [padded_params[-1]["w"], padded_params[-1]["b"]]

    # Actual VMEM footprint + 2x headroom, capped below v7x's 64 MiB per-TC VMEM.
    def _nbytes(a):
        return int(a.size) * a.dtype.itemsize
    footprint = _nbytes(x) + sum(_nbytes(a) for a in flat) + n * out_pad * 4
    vmem_limit = int(min(48 * 1024 * 1024, max(4 * 1024 * 1024, 2 * footprint)))

    flops = 2 * n * sum(int(l["w"].shape[0]) * int(l["w"].shape[1]) for l in padded_params)
    transcendentals = sum(int(l["w"].shape[1]) for l in padded_params[:-1])  # rsqrt per BN col
    cost = pl.CostEstimate(flops=flops, transcendentals=transcendentals,
                           bytes_accessed=footprint)

    vmem = pl.BlockSpec(memory_space=pltpu.MemorySpace.VMEM)
    out = pl.pallas_call(
        functools.partial(_mlp_fused_kernel, n_hidden),
        out_shape=jax.ShapeDtypeStruct((n, out_pad), x.dtype),
        in_specs=[vmem] * (1 + len(flat)),
        out_specs=vmem,
        compiler_params=pltpu.CompilerParams(vmem_limit_bytes=vmem_limit),
        cost_estimate=cost,
    )(x, *flat)
    return out[:, :output_size]


# ---------------------------------------------------------------------------
# Pure-JAX reference (torch semantics: training-mode BN, biased variance,
# hidden-layer biases INCLUDED — verifies the in-kernel bias drop is exact).
# Uses the same bf16-operand / f32-accumulate matmul contract as the kernel.
# ---------------------------------------------------------------------------
def reference_forward(x, params):
    for layer in params[:-1]:
        y = jnp.dot(x.astype(jnp.bfloat16), layer["w"].astype(jnp.bfloat16),
                    preferred_element_type=jnp.float32) + layer["b"]
        mean = jnp.mean(y, axis=0, keepdims=True)
        var = jnp.mean((y - mean) ** 2, axis=0, keepdims=True)
        x = (y - mean) * (layer["gamma"] * jax.lax.rsqrt(var + _BN_EPS)) + layer["beta"]
    return jnp.dot(x.astype(jnp.bfloat16), params[-1]["w"].astype(jnp.bfloat16),
                   preferred_element_type=jnp.float32) + params[-1]["b"]


if __name__ == "__main__":
    # Small, module-consistent shapes: batch=8, input=32, hidden=32, 2 hidden layers, output=8.
    batch, input_size, hidden_size, hidden_layers, output_size = 8, 32, 32, 2, 8

    key = jax.random.PRNGKey(0)
    key, kx = jax.random.split(key)
    x = jax.random.normal(kx, (batch, input_size), jnp.float32)

    params = init_params(key, input_size, output_size, hidden_layers, hidden_size)
    padded = pad_params(params)

    forward = jax.jit(functools.partial(mlp_forward, output_size=output_size))
    out = forward(x, padded)
    jax.block_until_ready(out)

    ref = reference_forward(x, params)
    assert out.shape == (batch, output_size), out.shape
    assert jnp.allclose(out, ref, atol=1e-3, rtol=1e-3), "mismatch vs reference"

    print("KERNEL_OK")
</pallas_src>

<mosaic_0001>
module attributes {stable_mosaic.version = 11 : i64} {
  func.func @_mlp_fused_kernel(%arg0: memref<8x32xf32, #tpu.memory_space<vmem>>, %arg1: memref<32x128xbf16, #tpu.memory_space<vmem>>, %arg2: memref<1x128xf32, #tpu.memory_space<vmem>>, %arg3: memref<1x128xf32, #tpu.memory_space<vmem>>, %arg4: memref<128x128xbf16, #tpu.memory_space<vmem>>, %arg5: memref<1x128xf32, #tpu.memory_space<vmem>>, %arg6: memref<1x128xf32, #tpu.memory_space<vmem>>, %arg7: memref<128x128xbf16, #tpu.memory_space<vmem>>, %arg8: memref<1x128xf32, #tpu.memory_space<vmem>>, %arg9: memref<8x128xf32, #tpu.memory_space<vmem>>) attributes {dimension_semantics = [], scalar_prefetch = 0 : i64, scratch_operands = 0 : i64, tpu.core_type = #tpu.core_type<tc>} {
    %c0 = arith.constant 0 : index
    %c0_0 = arith.constant 0 : index
    %0 = vector.load %arg0[%c0, %c0_0] : memref<8x32xf32, #tpu.memory_space<vmem>>, vector<8x32xf32>
    %1 = arith.truncf %0 : vector<8x32xf32> to vector<8x32xbf16>
    %c0_1 = arith.constant 0 : index
    %c0_2 = arith.constant 0 : index
    %2 = vector.load %arg1[%c0_1, %c0_2] : memref<32x128xbf16, #tpu.memory_space<vmem>>, vector<32x128xbf16>
    %cst = arith.constant dense<0.000000e+00> : vector<8x128xf32>
    %3 = tpu.matmul %1, %2, %cst {dimension_numbers = #tpu.dot_dimension_numbers<[1], [0], [0], [1], [0, 0, 1, 1], [], []>} : vector<8x32xbf16>, vector<32x128xbf16>, vector<8x128xf32> -> vector<8x128xf32>
    %cst_3 = arith.constant dense<0.000000e+00> : vector<128xf32>
    %4 = vector.multi_reduction <add>, %3, %cst_3 [0] : vector<8x128xf32> to vector<128xf32>
    %5 = vector.shape_cast %4 : vector<128xf32> to vector<1x128xf32>
    %cst_4 = arith.constant 1.250000e-01 : f32
    %6 = vector.broadcast %cst_4 : f32 to vector<1x128xf32>
    %7 = arith.mulf %5, %6 : vector<1x128xf32>
    %8 = vector.broadcast %7 : vector<1x128xf32> to vector<8x128xf32>
    %9 = arith.subf %3, %8 : vector<8x128xf32>
    %10 = arith.mulf %9, %9 : vector<8x128xf32>
    %cst_5 = arith.constant dense<0.000000e+00> : vector<128xf32>
    %11 = vector.multi_reduction <add>, %10, %cst_5 [0] : vector<8x128xf32> to vector<128xf32>
    %12 = vector.shape_cast %11 : vector<128xf32> to vector<1x128xf32>
    %cst_6 = arith.constant 1.250000e-01 : f32
    %13 = vector.broadcast %cst_6 : f32 to vector<1x128xf32>
    %14 = arith.mulf %12, %13 : vector<1x128xf32>
    %c0_7 = arith.constant 0 : index
    %c0_8 = arith.constant 0 : index
    %15 = vector.load %arg2[%c0_7, %c0_8] : memref<1x128xf32, #tpu.memory_space<vmem>>, vector<1x128xf32>
    %cst_9 = arith.constant 9.99999974E-6 : f32
    %16 = vector.broadcast %cst_9 : f32 to vector<1x128xf32>
    %17 = arith.addf %14, %16 : vector<1x128xf32>
    %18 = math.rsqrt %17 : vector<1x128xf32>
    %19 = arith.mulf %15, %18 : vector<1x128xf32>
    %20 = vector.broadcast %19 : vector<1x128xf32> to vector<8x128xf32>
    %21 = arith.mulf %9, %20 : vector<8x128xf32>
    %c0_10 = arith.constant 0 : index
    %c0_11 = arith.constant 0 : index
    %22 = vector.load %arg3[%c0_10, %c0_11] : memref<1x128xf32, #tpu.memory_space<vmem>>, vector<1x128xf32>
    %23 = vector.broadcast %22 : vector<1x128xf32> to vector<8x128xf32>
    %24 = arith.addf %21, %23 : vector<8x128xf32>
    %25 = arith.truncf %24 : vector<8x128xf32> to vector<8x128xbf16>
    %c0_12 = arith.constant 0 : index
    %c0_13 = arith.constant 0 : index
    %26 = vector.load %arg4[%c0_12, %c0_13] : memref<128x128xbf16, #tpu.memory_space<vmem>>, vector<128x128xbf16>
    %cst_14 = arith.constant dense<0.000000e+00> : vector<8x128xf32>
    %27 = tpu.matmul %25, %26, %cst_14 {dimension_numbers = #tpu.dot_dimension_numbers<[1], [0], [0], [1], [0, 0, 1, 1], [], []>} : vector<8x128xbf16>, vector<128x128xbf16>, vector<8x128xf32> -> vector<8x128xf32>
    %cst_15 = arith.constant dense<0.000000e+00> : vector<128xf32>
    %28 = vector.multi_reduction <add>, %27, %cst_15 [0] : vector<8x128xf32> to vector<128xf32>
    %29 = vector.shape_cast %28 : vector<128xf32> to vector<1x128xf32>
    %cst_16 = arith.constant 1.250000e-01 : f32
    %30 = vector.broadcast %cst_16 : f32 to vector<1x128xf32>
    %31 = arith.mulf %29, %30 : vector<1x128xf32>
    %32 = vector.broadcast %31 : vector<1x128xf32> to vector<8x128xf32>
    %33 = arith.subf %27, %32 : vector<8x128xf32>
    %34 = arith.mulf %33, %33 : vector<8x128xf32>
    %cst_17 = arith.constant dense<0.000000e+00> : vector<128xf32>
    %35 = vector.multi_reduction <add>, %34, %cst_17 [0] : vector<8x128xf32> to vector<128xf32>
    %36 = vector.shape_cast %35 : vector<128xf32> to vector<1x128xf32>
    %cst_18 = arith.constant 1.250000e-01 : f32
    %37 = vector.broadcast %cst_18 : f32 to vector<1x128xf32>
    %38 = arith.mulf %36, %37 : vector<1x128xf32>
    %c0_19 = arith.constant 0 : index
    %c0_20 = arith.constant 0 : index
    %39 = vector.load %arg5[%c0_19, %c0_20] : memref<1x128xf32, #tpu.memory_space<vmem>>, vector<1x128xf32>
    %cst_21 = arith.constant 9.99999974E-6 : f32
    %40 = vector.broadcast %cst_21 : f32 to vector<1x128xf32>
    %41 = arith.addf %38, %40 : vector<1x128xf32>
    %42 = math.rsqrt %41 : vector<1x128xf32>
    %43 = arith.mulf %39, %42 : vector<1x128xf32>
    %44 = vector.broadcast %43 : vector<1x128xf32> to vector<8x128xf32>
    %45 = arith.mulf %33, %44 : vector<8x128xf32>
    %c0_22 = arith.constant 0 : index
    %c0_23 = arith.constant 0 : index
    %46 = vector.load %arg6[%c0_22, %c0_23] : memref<1x128xf32, #tpu.memory_space<vmem>>, vector<1x128xf32>
    %47 = vector.broadcast %46 : vector<1x128xf32> to vector<8x128xf32>
    %48 = arith.addf %45, %47 : vector<8x128xf32>
    %49 = arith.truncf %48 : vector<8x128xf32> to vector<8x128xbf16>
    %c0_24 = arith.constant 0 : index
    %c0_25 = arith.constant 0 : index
    %50 = vector.load %arg7[%c0_24, %c0_25] : memref<128x128xbf16, #tpu.memory_space<vmem>>, vector<128x128xbf16>
    %cst_26 = arith.constant dense<0.000000e+00> : vector<8x128xf32>
    %51 = tpu.matmul %49, %50, %cst_26 {dimension_numbers = #tpu.dot_dimension_numbers<[1], [0], [0], [1], [0, 0, 1, 1], [], []>} : vector<8x128xbf16>, vector<128x128xbf16>, vector<8x128xf32> -> vector<8x128xf32>
    %c0_27 = arith.constant 0 : index
    %c0_28 = arith.constant 0 : index
    %52 = vector.load %arg8[%c0_27, %c0_28] : memref<1x128xf32, #tpu.memory_space<vmem>>, vector<1x128xf32>
    %53 = vector.broadcast %52 : vector<1x128xf32> to vector<8x128xf32>
    %54 = arith.addf %51, %53 : vector<8x128xf32>
    %c0_29 = arith.constant 0 : index
    %c0_30 = arith.constant 0 : index
    %55 = vector.load %arg9[%c0_29, %c0_30] : memref<8x128xf32, #tpu.memory_space<vmem>>, vector<8x128xf32>
    tpu.vector_store %arg9[%c0_29, %c0_30], %54 {strides = array<i32>} : memref<8x128xf32, #tpu.memory_space<vmem>>, vector<8x128xf32>,
    return
  }
}

</mosaic_0001>

<bundles_post_ra>
// kernel: mlp_forward.1
= control target key start
LH: loop header
LB: loop body
LE: loop exit
PB: predicated region body
PF: predicated region fallthrough
CT: control target
= control target key end

     0   :  { %14 = vsyncpa [#allocation3], 0  ;;  %s858_s0 = inlined_call_operand.hbm [shape: f32[8,32], index: 0, kind: input, shape index: {}]   ;;  %s859_s1 = inlined_call_operand.hbm [shape: bf16[32,128], index: 1, kind: input, shape index: {}]   ;;  %s860_s2 = inlined_call_operand.vmem [shape: f32[1,128], index: 2, kind: input, shape index: {}]   ;;  %s861_s3 = inlined_call_operand.vmem [shape: f32[1,128], index: 3, kind: input, shape index: {}]   ;;  %s862_s4 = inlined_call_operand.hbm [shape: bf16[128,128], index: 4, kind: input, shape index: {}]   ;;  %s863_s5 = inlined_call_operand.vmem [shape: f32[1,128], index: 5, kind: input, shape index: {}]   ;;  %s864_s6 = inlined_call_operand.vmem [shape: f32[1,128], index: 6, kind: input, shape index: {}]   ;;  %s865_s7 = inlined_call_operand.hbm [shape: bf16[128,128], index: 7, kind: input, shape index: {}]   ;;  %s866_s8 = inlined_call_operand.vmem [shape: f32[1,128], index: 8, kind: input, shape index: {}]   ;;  %s867_s9 = inlined_call_operand.hbm [shape: f32[8,128], index: 9, kind: output, shape index: {}]  }
   0x1   :  { %15 = vsyncpa [#allocation6], 0 }
   0x2   :  { %16 = vsyncpa [#allocation9], 0 }
   0x3   :  { %17 = vsyncpa [#allocation4], 0  ;;  %s694_s30 = smov [#allocation5]   ;;  %s576_s13 = scalar_lea.hbm %s859_s1, 256 }
   0x4   :  { %s33_s10 = sshll.u32 %s694_s30, 4  ;;  %p577_p0 = scmp.ne.s32.totalorder %s859_s1, %s576_s13  ;;  %s34_s10 = int_to_ptr.vmem [resolvable:$true] %s33_s10 }
   0x5   :  { %p580_p1 = scmp.lt.u32.totalorder %s576_s13, %s859_s1 }
   0x7   :  { %p582_p2 = pnand %p580_p1, %p577_p0 }
   0x9   :  { %585 = shalt.err (!%p582_p2)
}
   0xa   :  { %s586_s18 = scalar_lea.vmem %s34_s10, 256  ;;  %p591_p4 = scmp.lt.s32.totalorder %s34_s10, %s34_s10 }
   0xb   :  { %p587_p3 = scmp.ne.s32.totalorder %s34_s10, %s586_s18  ;;  %p592_p5 = scmp.lt.s32.totalorder %s586_s18, %s586_s18 }
   0xd   :  { %p593_p6 = por %p592_p5, %p591_p4 }
   0xf   :  { %p594_p7 = pnand %p593_p6, %p587_p3 }
  0x11   :  { %597 = shalt.err (!%p594_p7)
}
  0x12   :  { %s695_s19 = smov 64   ;;  %s696_s20 = smov 4  }
  0x13   :  { %39 = dma.hbm_to_vmem [thread:$0]  %s859_s1, 256, %s34_s10, [#allocation6], %s695_s19, %s695_s19, %s696_s20  }
  0x14   :  { %s697_s23 = smov [#allocation2]   ;;  %s698_s25 = smov [#allocation7]  }
  0x15   :  { %s24_s24 = sshll.u32 %s697_s23, 4  ;;  %s49_s26 = sshll.u32 %s698_s25, 4  ;;  %s25_s24 = int_to_ptr.vmem [resolvable:$true] %s24_s24  ;;  %s50_s26 = int_to_ptr.vmem [resolvable:$true] %s49_s26 }
  0x16   :  { %s598_s29 = scalar_lea.hbm %s858_s0, 128 }
  0x17   :  { %p599_p8 = scmp.ne.s32.totalorder %s858_s0, %s598_s29  ;;  %p602_p9 = scmp.lt.u32.totalorder %s598_s29, %s858_s0 }
  0x19   :  { %p604_p10 = pnand %p602_p9, %p599_p8 }
  0x1b   :  { %607 = shalt.err (!%p604_p10)
}
  0x1c   :  { %s608_s1 = scalar_lea.vmem %s25_s24, 128  ;;  %p613_p12 = scmp.lt.s32.totalorder %s25_s24, %s25_s24 }
  0x1d   :  { %p609_p11 = scmp.ne.s32.totalorder %s25_s24, %s608_s1  ;;  %p614_p13 = scmp.lt.s32.totalorder %s608_s1, %s608_s1 }
  0x1f   :  { %p615_p0 = por %p614_p13, %p613_p12 }
  0x21   :  { %p616_p1 = pnand %p615_p0, %p609_p11 }
  0x23   :  { %619 = shalt.err (!%p616_p1)
}
  0x24   :  { %27 = dma.hbm_to_vmem [thread:$0]  %s858_s0, 128, %s25_s24, [#allocation3]  }
  0x25   :  { %s620_s17 = scalar_lea.hbm %s862_s4, 1024 }
  0x26   :  { %p621_p2 = scmp.ne.s32.totalorder %s862_s4, %s620_s17  ;;  %p624_p3 = scmp.lt.u32.totalorder %s620_s17, %s862_s4 }
  0x28   :  { %p626_p4 = pnand %p624_p3, %p621_p2 }
  0x2a   :  { %629 = shalt.err (!%p626_p4)
}
  0x2b   :  { %s630_s25 = scalar_lea.vmem %s50_s26, 1024  ;;  %p635_p6 = scmp.lt.s32.totalorder %s50_s26, %s50_s26 }
  0x2c   :  { %p631_p5 = scmp.ne.s32.totalorder %s50_s26, %s630_s25  ;;  %p636_p7 = scmp.lt.s32.totalorder %s630_s25, %s630_s25 }
  0x2e   :  { %p637_p8 = por %p636_p7, %p635_p6 }
  0x30   :  { %p638_p9 = pnand %p637_p8, %p631_p5 }
  0x32   :  { %641 = shalt.err (!%p638_p9)
}
  0x33   :  { %55 = dma.hbm_to_vmem [thread:$0]  %s862_s4, 1024, %s50_s26, [#allocation6], %s695_s19, %s695_s19, %s696_s20  }
  0x34   :  { %s699_s27 = smov [#allocation8]   ;;  %s642_s11 = scalar_lea.hbm %s865_s7, 1024 }
  0x35   :  { %s65_s28 = sshll.u32 %s699_s27, 4  ;;  %p643_p10 = scmp.ne.s32.totalorder %s865_s7, %s642_s11  ;;  %s66_s28 = int_to_ptr.vmem [resolvable:$true] %s65_s28 }
  0x36   :  { %p646_p11 = scmp.lt.u32.totalorder %s642_s11, %s865_s7 }
  0x38   :  { %p648_p12 = pnand %p646_p11, %p643_p10 }
  0x3a   :  { %651 = shalt.err (!%p648_p12)
}
  0x3b   :  { %s652_s14 = scalar_lea.vmem %s66_s28, 1024  ;;  %p657_p0 = scmp.lt.s32.totalorder %s66_s28, %s66_s28 }
  0x3c   :  { %p653_p13 = scmp.ne.s32.totalorder %s66_s28, %s652_s14  ;;  %p658_p1 = scmp.lt.s32.totalorder %s652_s14, %s652_s14 }
  0x3e   :  { %p659_p2 = por %p658_p1, %p657_p0 }
  0x40   :  { %p660_p3 = pnand %p659_p2, %p653_p13 }
  0x42   :  { %663 = shalt.err (!%p660_p3)
}
  0x43   :  { %71 = dma.hbm_to_vmem [thread:$0]  %s865_s7, 1024, %s66_s28, [#allocation9], %s695_s19, %s695_s19, %s696_s20  }
  0x44   :  { %686 = dma.done.wait [#allocation3], 128  }
  0x45   :  { %687 = vsyncadd [#allocation3], 4294967168 }
  0x46   :  { %688 = dma.done.wait [#allocation6], 1280  }
  0x47   :  { %689 = vsyncadd [#allocation6], 4294966016 }
  0x48   :  { %690 = dma.done.wait [#allocation9], 1024  }
  0x49   :  { %691 = vsyncadd [#allocation9], 4294966272  ;;  %v700_v0 = vmov 0.0   ;;  %vm701_vm0 = vmmov 0   ;;  %v554_v1 = vld [vmem:[#allocation5] sm:$0xff]   ;;  %v555_v2 = vld [vmem:[#allocation5 + $0x8] sm:$0xff]   ;;  %v170_v34 = vlaneseq }
  0x4a   :  { %497 = vmatprep.subr.bf16.mxu0 %v700_v0  ;;  %501 = vmatprep.mubr.msk.bf16.mxu0 %vm701_vm0, %v700_v0  ;;  %v87_v3 = vld [vmem:[#allocation2] sm:$0xff]  ;;  %vm105_vm1 = vcmask 261120   ;;  %v556_v5 = vld [vmem:[#allocation7] sm:$0xff]   ;;  %v558_v7 = vld [vmem:[#allocation7 + $0x10] sm:$0xff]   ;;  %s702_s22 = smov [#allocation10]  }
  0x4b   :  { %505 = vmatprep.subr.bf16.mxu1 %v700_v0  ;;  %521 = vmatprep.mubr.msk.bf16.mxu1 %vm701_vm0, %v700_v0  ;;  %v88_v4 = vpack.c.bf16 %v87_v3, %v87_v3  ;;  %v557_v6 = vld [vmem:[#allocation7 + $0x8] sm:$0xff]   ;;  %v559_v8 = vld [vmem:[#allocation7 + $0x18] sm:$0xff]   ;;  %v560_v9 = vld [vmem:[#allocation7 + $0x20] sm:$0xff]   ;;  %v171_v35 = vshrl.u32 %v170_v34, 7  ;;  %s443_s23 = sshll.u32 %s702_s22, 4  ;;  %s444_s23 = int_to_ptr.vmem [resolvable:$true] %s443_s23 }
  0x4c   :  { %498 = vmatpush3.bf16.msra.mxu0 %v554_v1  ;;  %506 = vmatpush3.bf16.msra.mxu1 %v556_v5  ;;  %v561_v10 = vld [vmem:[#allocation7 + $0x28] sm:$0xff]   ;;  %v562_v11 = vld [vmem:[#allocation7 + $0x30] sm:$0xff]   ;;  %v563_v12 = vld [vmem:[#allocation7 + $0x38] sm:$0xff]   ;;  %p669_p5 = scmp.lt.s32.totalorder %s444_s23, %s444_s23 }
  0x4d   :  { %499 = vmatprep.subr.bf16.mxu0 %v700_v0  ;;  %507 = vmatprep.subr.bf16.mxu1 %v700_v0  ;;  %v165_v36 = vld [vmem:[%s860_s2] sm:$0x1]  ;;  %v172_v37 = vsub.s32 0, %v171_v35  ;;  %v564_v45 = vld [vmem:[#allocation8] sm:$0xff]   ;;  %v566_v47 = vld [vmem:[#allocation8 + $0x10] sm:$0xff]  }
  0x4e   :  { %v457_v41 = vld [vmem:[%s861_s3] ss:$0 sm:$0xff]  ;;  %v567_v48 = vld [vmem:[#allocation8 + $0x18] sm:$0xff]   ;;  %v568_v49 = vld [vmem:[#allocation8 + $0x20] sm:$0xff]  }
  0x4f   :  { %v565_v46 = vld [vmem:[#allocation8 + $0x8] sm:$0xff]   ;;  %v570_v51 = vld [vmem:[#allocation8 + $0x30] sm:$0xff]   ;;  %v571_v52 = vld [vmem:[#allocation8 + $0x38] sm:$0xff]  }
  0x50   :  { %500 = vmatpush3.bf16.msra.mxu0 %v555_v2  ;;  %508 = vmatpush3.bf16.msra.mxu1 %v557_v6  ;;  %v569_v50 = vld [vmem:[#allocation8 + $0x28] sm:$0xff]  }
  0x51   :  { %525 = vmatprep.subr.bf16.mxu0 %v700_v0  ;;  %509 = vmatprep.subr.bf16.mxu1 %v700_v0 }
  0x53   :  { %502 = vmatmul.mubr.msk.bf16.vlgmr.msra.gmra.mrb[0].mxu0 %vm105_vm1, %v88_v4 }
  0x54   :  { %541 = vmatprep.mubr.msk.bf16.mxu0 %vm701_vm0, %v700_v0  ;;  %510 = vmatpush3.bf16.msra.mxu1 %v558_v7 }
  0x55   :  { %511 = vmatprep.subr.bf16.mxu1 %v700_v0  ;;  %526 = vmatpush3.bf16.msra.mxu0 %v564_v45 }
  0x56   :  { %527 = vmatprep.subr.bf16.mxu0 %v700_v0 }
  0x58   :  { %512 = vmatpush3.bf16.msra.mxu1 %v559_v8 }
  0x59   :  { %513 = vmatprep.subr.bf16.mxu1 %v700_v0  ;;  %528 = vmatpush3.bf16.msra.mxu0 %v565_v46 }
  0x5a   :  { %529 = vmatprep.subr.bf16.mxu0 %v700_v0 }
  0x5c   :  { %514 = vmatpush3.bf16.msra.mxu1 %v560_v9 }
  0x5d   :  { %515 = vmatprep.subr.bf16.mxu1 %v700_v0  ;;  %530 = vmatpush3.bf16.msra.mxu0 %v566_v47 }
  0x5e   :  { %531 = vmatprep.subr.bf16.mxu0 %v700_v0 }
  0x60   :  { %516 = vmatpush3.bf16.msra.mxu1 %v561_v10  ;;  %v305_v10 = vld [vmem:[%s863_s5] sm:$0x1]  ;;  %s664_s5 = scalar_lea.vmem %s444_s23, 128 }
  0x61   :  { %517 = vmatprep.subr.bf16.mxu1 %v700_v0  ;;  %532 = vmatpush3.bf16.msra.mxu0 %v567_v48  ;;  %p665_p4 = scmp.ne.s32.totalorder %s444_s23, %s664_s5  ;;  %p670_p6 = scmp.lt.s32.totalorder %s664_s5, %s664_s5 }
  0x62   :  { %533 = vmatprep.subr.bf16.mxu0 %v700_v0 }
  0x63   :  { %p671_p7 = por %p670_p6, %p669_p5 }
  0x64   :  { %518 = vmatpush3.bf16.msra.mxu1 %v562_v11 }
  0x65   :  { %519 = vmatprep.subr.bf16.mxu1 %v700_v0  ;;  %534 = vmatpush3.bf16.msra.mxu0 %v568_v49  ;;  %p672_p8 = pnand %p671_p7, %p665_p4 }
  0x66   :  { %535 = vmatprep.subr.bf16.mxu0 %v700_v0 }
  0x68   :  { %520 = vmatpush3.bf16.msra.mxu1 %v563_v12 }
  0x69   :  { %536 = vmatpush3.bf16.msra.mxu0 %v569_v50 }
  0x6a   :  { %537 = vmatprep.subr.bf16.mxu0 %v700_v0 }
  0x6d   :  { %538 = vmatpush3.bf16.msra.mxu0 %v570_v51 }
  0x6e   :  { %539 = vmatprep.subr.bf16.mxu0 %v700_v0 }
  0x71   :  { %540 = vmatpush3.bf16.msra.mxu0 %v571_v52 }
 0x126   :  { %v143_v13 = vpop.f32.mrb[0].mxu0 }
 0x127   :  { %v149_v14 = vrot.slane %v143_v13, 4  ;;  %v503_v15 = vpop.f32.mrb[1].mxu0 }
 0x128   :  { %v146_v16 = vpop.f32.mrb[2].mxu0 }
 0x129   :  { %v150_v17 = vadd.f32 %v149_v14, %v143_v13  ;;  %v504_v18 = vpop.f32.mrb[3].mxu0  ;;  %v466_v14 = vld [vmem:[%s864_s6] ss:$0 sm:$0xff] }
 0x12a   :  { %v467_v18 = vld [vmem:[%s866_s8] ss:$0 sm:$0xff] }
 0x12b   :  { %v151_v19 = vrot.slane %v150_v17, 2 }
 0x12d   :  { %v152_v20 = vadd.f32 %v151_v19, %v150_v17 }
 0x12f   :  { %v153_v21 = vrot.slane %v152_v20, 1 }
 0x131   :  { %v154_v22 = vadd.f32 %v153_v21, %v152_v20 }
 0x133   :  { %v155_v23 = vmul.f32 0.125, %v154_v22 }
 0x135   :  { %v156_v24 = vsub.f32 %v143_v13, %v155_v23 }
 0x137   :  { %v157_v25 = vmul.f32 %v156_v24, %v156_v24 }
 0x139   :  { %v158_v26 = vrot.slane %v157_v25, 4 }
 0x13b   :  { %v159_v27 = vadd.f32 %v158_v26, %v157_v25 }
 0x13d   :  { %v160_v28 = vrot.slane %v159_v27, 2 }
 0x13f   :  { %v161_v29 = vadd.f32 %v160_v28, %v159_v27 }
 0x141   :  { %v162_v30 = vrot.slane %v161_v29, 1 }
 0x143   :  { %v163_v31 = vadd.f32 %v162_v30, %v161_v29 }
 0x145   :  { %v164_v32 = vmul.f32 0.125, %v163_v31 }
 0x147   :  { %v166_v33 = vadd.f32 1e-05, %v164_v32 }
 0x149   :  { %572 = vrsqrt.f32 %v166_v33 }
 0x153   :  { %v573_v38 = vpop.eup %572 }
 0x154   :  { %v168_v39 = vmul.f32 %v573_v38, %v165_v36 }
 0x156   :  { %v173_v40 = vrot.slane %v168_v39, %v172_v37 }
 0x158   :  { %v175_v42 = vmul.f32 %v173_v40, %v156_v24 }
 0x15a   :  { %v183_v43 = vadd.f32 %v457_v41, %v175_v42 }
 0x15c   :  { %v184_v44 = vpack.c.bf16 %v183_v43, %v183_v43 }
 0x15e   :  { %522 = vmatmul.mubr.bf16.vlgmr.msra.gmra.mrb[0].mxu1 %v184_v44 }
 0x231   :  { %v283_v53 = vpop.f32.mrb[0].mxu1 }
 0x232   :  { %v289_v54 = vrot.slane %v283_v53, 4  ;;  %v523_v55 = vpop.f32.mrb[1].mxu1 }
 0x233   :  { %v286_v56 = vpop.f32.mrb[2].mxu1 }
 0x234   :  { %v290_v57 = vadd.f32 %v289_v54, %v283_v53  ;;  %v524_v58 = vpop.f32.mrb[3].mxu1 }
 0x236   :  { %v291_v59 = vrot.slane %v290_v57, 2 }
 0x238   :  { %v292_v60 = vadd.f32 %v291_v59, %v290_v57 }
 0x23a   :  { %v293_v61 = vrot.slane %v292_v60, 1 }
 0x23c   :  { %v294_v62 = vadd.f32 %v293_v61, %v292_v60 }
 0x23e   :  { %v295_v63 = vmul.f32 0.125, %v294_v62 }
 0x240   :  { %v296_v1 = vsub.f32 %v283_v53, %v295_v63 }
 0x242   :  { %v297_v2 = vmul.f32 %v296_v1, %v296_v1 }
 0x244   :  { %v298_v3 = vrot.slane %v297_v2, 4 }
 0x246   :  { %v299_v4 = vadd.f32 %v298_v3, %v297_v2 }
 0x248   :  { %v300_v5 = vrot.slane %v299_v4, 2 }
 0x24a   :  { %v301_v6 = vadd.f32 %v300_v5, %v299_v4 }
 0x24c   :  { %v302_v0 = vrot.slane %v301_v6, 1 }
 0x24e   :  { %v303_v7 = vadd.f32 %v302_v0, %v301_v6 }
 0x250   :  { %v304_v8 = vmul.f32 0.125, %v303_v7 }
 0x252   :  { %v306_v9 = vadd.f32 1e-05, %v304_v8 }
 0x254   :  { %574 = vrsqrt.f32 %v306_v9 }
 0x25e   :  { %v575_v11 = vpop.eup %574 }
 0x25f   :  { %v308_v12 = vmul.f32 %v575_v11, %v305_v10 }
 0x261   :  { %v313_v13 = vrot.slane %v308_v12, %v172_v37 }
 0x263   :  { %v315_v15 = vmul.f32 %v313_v13, %v296_v1 }
 0x265   :  { %v323_v16 = vadd.f32 %v466_v14, %v315_v15 }
 0x267   :  { %v324_v17 = vpack.c.bf16 %v323_v16, %v323_v16 }
 0x269   :  { %542 = vmatmul.mubr.bf16.vlgmr.msra.gmra.mrb[4].mxu0 %v324_v17 }
 0x33c   :  { %v430_v19 = vpop.f32.mrb[4].mxu0 }
 0x33d   :  { %v431_v20 = vadd.f32 %v467_v18, %v430_v19  ;;  %v543_v21 = vpop.f32.mrb[5].mxu0 }
 0x33e   :  { %v433_v22 = vpop.f32.mrb[6].mxu0 }
 0x33f   :  { %436 = vst [vmem:[#allocation10] sm:$0xff] %v431_v20  ;;  %v544_v23 = vpop.f32.mrb[7].mxu0 }
 0x340   :  { %675 = shalt.err (!%p672_p8)
}
 0x341   :  { %s676_s8 = scalar_lea.hbm %s867_s9, 128 }
 0x342   :  { %p677_p9 = scmp.ne.s32.totalorder %s867_s9, %s676_s8  ;;  %p680_p10 = scmp.lt.u32.totalorder %s676_s8, %s867_s9 }
 0x344   :  { %p682_p11 = pnand %p680_p10, %p677_p9 }
 0x346   :  { %685 = shalt.err (!%p682_p11)
}
 0x347   :  { %446 = dma.vmem_to_hbm [thread:$0]  %s444_s23, 128, %s867_s9, [#allocation4]  }
 0x348   :  { %692 = dma.done.wait [#allocation4], 128  }
 0x349   :  { %693 = vsyncadd [#allocation4], 4294967168 }
 0x34a   :  { %450 = vsyncpa [#allocation3], 1 }
 0x34b   :  { %451 = vsyncpa [#allocation6], 1 }
 0x34c   :  { %452 = vsyncpa [#allocation9], 1 }
 0x34d   :  { %453 = vsyncpa [#allocation4], 1 }

</bundles_post_ra>
